<compile_context>
chip_gen: v7x
topology: tpu7x:2x2x1
jax: 0.10.0
libtpu: 0.0.40
codegen_flags: <defaults>
</compile_context>

<pallas_src>
import jax
import jax.numpy as jnp
from jax.experimental import pallas as pl
from jax.experimental.pallas import tpu as pltpu

NUM_MODELS = 3
NUM_CLASSES = 8
BBOX_DIM = 4
N_OUT = NUM_CLASSES + BBOX_DIM   # 12
N_PAD = 128                      # lane-dense output slab width
_LANE = 128


# ----------------------------- kernels ---------------------------------------

def _ensemble_head_kernel(x_ref, w_ref, b_ref, out_ref):
    # Single MXU push per batch tile; lane-dense [TB, 128] unmasked store.
    # bf16 inputs accumulate in f32 via preferred_element_type.
    out_ref[...] = (
        jnp.dot(x_ref[...], w_ref[...], preferred_element_type=jnp.float32)
        + b_ref[...]
    ).astype(out_ref.dtype)


def _ensemble_head_kernel_ktiled(x_ref, w_ref, b_ref, out_ref, acc_ref):
    # D-reduction variant: accumulate partial [TB, 128] products across k tiles.
    k = pl.program_id(1)

    @pl.when(k == 0)
    def _():
        acc_ref[...] = jnp.zeros_like(acc_ref)

    acc_ref[...] += jnp.dot(x_ref[...], w_ref[...],
                            preferred_element_type=jnp.float32)

    @pl.when(k == pl.num_programs(1) - 1)
    def _():
        out_ref[...] = (acc_ref[...] + b_ref[...]).astype(out_ref.dtype)


# --------------------------- sizing helpers -----------------------------------

def _round_up(x, m):
    return ((x + m - 1) // m) * m


def _round_down(x, m):
    return (x // m) * m


def _vmem_budget():
    """(usable VMEM budget for our blocks, physical capacity). v7x-aware."""
    cap = 64 << 20  # conservative floor: v7x per-TensorCore VMEM
    try:
        info = pltpu.get_tpu_info()
        cap = int(getattr(info, "vmem_capacity_bytes", cap))
    except Exception:
        pass
    budget = max(cap - (16 << 20), 12 << 20)   # leave headroom for compiler scratch
    return budget, cap


def _vmem_limit(usage_bytes, vmem_cap):
    """Explicit scoped-VMEM limit for CompilerParams."""
    limit = max(int(usage_bytes * 1.25) + (2 << 20), 16 << 20)
    return int(min(limit, max(vmem_cap - (8 << 20), 16 << 20)))


def _simple_vmem(tb, d, in_bytes):
    # 2x double-buffered x tile + single-buffered folded weights + bias
    # + 2x f32 out tile.
    return 2 * tb * d * in_bytes + d * _LANE * in_bytes + _LANE * 4 + 2 * tb * _LANE * 4


def _ktiled_vmem(tb, tk, in_bytes):
    # 2x x tile + 2x w tile + bias + 2x f32 out tile + f32 accumulator scratch.
    return (2 * tb * tk * in_bytes + 2 * tk * _LANE * in_bytes + _LANE * 4
            + 2 * tb * _LANE * 4 + tb * _LANE * 4)


def _select_tiles(B, D, in_bytes, sub, budget):
    """Pick (TB, TK). TK is None when the whole feature dim fits resident in VMEM."""
    tb = min(_round_up(B, sub), 2048)
    while True:
        if _simple_vmem(tb, D, in_bytes) <= budget:
            return tb, None
        if tb <= sub:
            break
        tb = max(sub, _round_down(tb // 2, sub))

    # Whole-D does not fit: tile the reduction dim (requires lane-divisible D).
    if D % _LANE == 0:
        tb = min(_round_up(B, sub), 512)
        while True:
            tk = _round_down(min(D, 4096), _LANE)
            while tk >= _LANE:
                if D % tk == 0 and _ktiled_vmem(tb, tk, in_bytes) <= budget:
                    return tb, tk
                tk -= _LANE
            if tb <= sub:
                break
            tb = max(sub, _round_down(tb // 2, sub))

    # TODO(synk): D neither VMEM-resident nor lane-divisible — fall back to a
    # minimal batch tile and let vmem_limit_bytes stretch; a general remainder
    # K-tile would need input padding or pl.BoundedSlice.
    return sub, None


def _resident_spec(block_shape, index_map):
    """BlockSpec for a block whose index_map is constant: it is only DMA'd once,
    so a single VMEM buffer suffices (saves a D*128*itemsize double buffer)."""
    try:
        return pl.BlockSpec(block_shape, index_map,
                            pipeline_mode=pl.Buffered(buffer_count=1))
    except TypeError:  # jax version without pipeline_mode / Buffered kwarg
        return pl.BlockSpec(block_shape, index_map)


# ------------------------ fold (hoist out of per-call path) -------------------

def fold_ensemble_params(params, detection_weights, bbox_weights,
                         compute_dtype=jnp.float32):
    """Fold the linear ensemble into one effective [D, 128] weight + [1, 128] bias.

    Call this ONCE when weights/params are static between forwards; reuse the
    result with `ensemble_apply` (removes the 3x-model einsum/concat/pad from the
    per-call path).
    """
    wdet, bdet, wbox, bbox = params                       # [M,D,Cd],[M,Cd],[M,D,4],[M,4]
    det_w = jnp.asarray(detection_weights, dtype=jnp.float32)   # [M]
    box_w = jnp.asarray(bbox_weights, dtype=jnp.float32)        # [M]
    # Matches the reference's behavior on zero-sum weights (no guard there either).
    det_sum = jnp.sum(det_w)
    box_sum = jnp.sum(box_w)

    w_eff_det = jnp.einsum("m,mdc->dc", det_w, wdet) / det_sum   # [D, NUM_CLASSES]
    b_eff_det = jnp.einsum("m,mc->c", det_w, bdet) / det_sum     # [NUM_CLASSES]
    w_eff_box = jnp.einsum("m,mdc->dc", box_w, wbox) / box_sum   # [D, BBOX_DIM]
    b_eff_box = jnp.einsum("m,mc->c", box_w, bbox) / box_sum     # [BBOX_DIM]

    w_cat = jnp.concatenate([w_eff_det, w_eff_box], axis=1)      # [D, 12]
    b_cat = jnp.concatenate([b_eff_det, b_eff_box], axis=0)      # [12]
    w_pad = jnp.pad(w_cat, ((0, 0), (0, N_PAD - N_OUT))).astype(compute_dtype)
    b_pad = jnp.pad(b_cat, (0, N_PAD - N_OUT)).reshape(1, N_PAD).astype(jnp.float32)
    return w_pad, b_pad


# ------------------------------- forward --------------------------------------

def ensemble_apply(x_nchw, w_pad, b_pad):
    """Apply the pre-folded ensemble head.

    x_nchw: [B, C, H, W]; w_pad: [D, 128] (f32 or bf16); b_pad: [1, 128] f32.
    Returns (avg_detect [B, NUM_CLASSES] f32, avg_bbox [B, BBOX_DIM] f32).
    """
    B = x_nchw.shape[0]
    x2d = x_nchw.reshape(B, -1)                    # glue: NCHW -> [B, D]
    D = x2d.shape[1]
    assert w_pad.shape == (D, N_PAD) and b_pad.shape == (1, N_PAD)

    compute_dtype = w_pad.dtype
    # In a real pipeline the activation should already arrive in compute_dtype
    # (or the cast fuses with its producer under jit); this is a no-op then.
    if x2d.dtype != compute_dtype:
        x2d = x2d.astype(compute_dtype)
    in_bytes = jnp.dtype(compute_dtype).itemsize
    sub = 8 * (4 // in_bytes)                      # sublane packing: f32->8, bf16->16

    budget, vmem_cap = _vmem_budget()
    tb, tk = _select_tiles(B, D, in_bytes, sub, budget)

    grid_b = pl.cdiv(B, tb)
    # Megacore: keep >=2 batch steps when per-step DMA dwarfs the ~0.35us step
    # overhead (feeds v7x's second TensorCore; ~free on single-TC v5e/v6e).
    if tk is None and grid_b == 1 and B >= 2 * sub and tb * D * in_bytes >= (2 << 20):
        tb = max(sub, _round_up(pl.cdiv(B, 2), sub))
        grid_b = pl.cdiv(B, tb)

    if tk is None:
        vmem_limit = _vmem_limit(_simple_vmem(tb, D, in_bytes), vmem_cap)
        out = pl.pallas_call(
            _ensemble_head_kernel,
            out_shape=jax.ShapeDtypeStruct((B, N_PAD), jnp.float32),
            grid=(grid_b,),
            in_specs=[
                pl.BlockSpec((tb, D), lambda b: (b, 0)),         # x tile per step
                _resident_spec((D, N_PAD), lambda b: (0, 0)),    # folded weights
                _resident_spec((1, N_PAD), lambda b: (0, 0)),    # folded bias
            ],
            out_specs=pl.BlockSpec((tb, N_PAD), lambda b: (b, 0)),
            compiler_params=pltpu.CompilerParams(
                dimension_semantics=("parallel",),
                vmem_limit_bytes=vmem_limit,
            ),
        )(x2d, w_pad, b_pad)
    else:
        grid_k = D // tk
        vmem_limit = _vmem_limit(_ktiled_vmem(tb, tk, in_bytes), vmem_cap)
        out = pl.pallas_call(
            _ensemble_head_kernel_ktiled,
            out_shape=jax.ShapeDtypeStruct((B, N_PAD), jnp.float32),
            grid=(grid_b, grid_k),
            in_specs=[
                pl.BlockSpec((tb, tk), lambda b, k: (b, k)),
                pl.BlockSpec((tk, N_PAD), lambda b, k: (k, 0)),
                _resident_spec((1, N_PAD), lambda b, k: (0, 0)),
            ],
            out_specs=pl.BlockSpec((tb, N_PAD), lambda b, k: (b, 0)),
            scratch_shapes=[pltpu.VMEM((tb, N_PAD), jnp.float32)],
            compiler_params=pltpu.CompilerParams(
                dimension_semantics=("parallel", "arbitrary"),
                vmem_limit_bytes=vmem_limit,
            ),
        )(x2d, w_pad, b_pad)

    # Output slab stays f32 (tiny vs x traffic) so the sliced heads keep full precision.
    avg_detect = out[:, :NUM_CLASSES]
    avg_bbox = out[:, NUM_CLASSES:N_OUT]
    return avg_detect, avg_bbox


def weighted_ensemble_forward(x_nchw, params, detection_weights, bbox_weights,
                              compute_dtype=jnp.float32):
    """One-shot convenience (fold + apply).  For repeated calls with static
    weights, call fold_ensemble_params once and reuse ensemble_apply."""
    w_pad, b_pad = fold_ensemble_params(params, detection_weights, bbox_weights,
                                        compute_dtype=compute_dtype)
    return ensemble_apply(x_nchw, w_pad, b_pad)


# ------------------------------ test harness ----------------------------------

def init_params(key, d_in):
    """Deterministic per-model head parameters."""
    k1, k2, k3, k4 = jax.random.split(key, 4)
    scale = 1.0 / jnp.sqrt(jnp.float32(d_in))
    wdet = jax.random.normal(k1, (NUM_MODELS, d_in, NUM_CLASSES), jnp.float32) * scale
    bdet = jax.random.normal(k2, (NUM_MODELS, NUM_CLASSES), jnp.float32) * 0.01
    wbox = jax.random.normal(k3, (NUM_MODELS, d_in, BBOX_DIM), jnp.float32) * scale
    bbox = jax.random.normal(k4, (NUM_MODELS, BBOX_DIM), jnp.float32) * 0.01
    return wdet, bdet, wbox, bbox


def reference_forward(x_nchw, params, detection_weights, bbox_weights):
    """Pure-JAX reference matching the PyTorch module semantics."""
    B = x_nchw.shape[0]
    xf = x_nchw.reshape(B, -1)
    wdet, bdet, wbox, bbox = params
    det_outs, box_outs = [], []
    for m in range(NUM_MODELS):
        det = xf @ wdet[m] + bdet[m]
        box = xf @ wbox[m] + bbox[m]
        det_outs.append(det * detection_weights[m])
        box_outs.append(box * bbox_weights[m])
    sum_det = jnp.stack(det_outs, 0).sum(0)
    sum_box = jnp.stack(box_outs, 0).sum(0)
    return sum_det / sum(detection_weights), sum_box / sum(bbox_weights)


if __name__ == "__main__":
    key = jax.random.PRNGKey(0)
    kx, kp = jax.random.split(key)

    B, C, H, W = 2, 4, 16, 16
    x = jax.random.normal(kx, (B, C, H, W), jnp.float32)   # NCHW
    params = init_params(kp, C * H * W)

    detection_weights = [0.5, 1.0, 1.5]
    bbox_weights = [1.0, 2.0, 1.0]

    ref_det, ref_box = reference_forward(x, params, detection_weights, bbox_weights)

    # --- f32 path: checks the forward semantics tightly -----------------------
    w32, b32 = fold_ensemble_params(params, detection_weights, bbox_weights,
                                    compute_dtype=jnp.float32)
    det32, box32 = ensemble_apply(x, w32, b32)
    jax.block_until_ready((det32, box32))
    assert det32.shape == (B, NUM_CLASSES) and box32.shape == (B, BBOX_DIM)
    assert jnp.allclose(det32, ref_det, atol=1e-4, rtol=1e-4)
    assert jnp.allclose(box32, ref_box, atol=1e-4, rtol=1e-4)

    # --- bf16 path: halves the dominant x/w HBM traffic, f32 MXU accumulate ---
    w16, b16 = fold_ensemble_params(params, detection_weights, bbox_weights,
                                    compute_dtype=jnp.bfloat16)
    det16, box16 = ensemble_apply(x, w16, b16)
    jax.block_until_ready((det16, box16))
    assert det16.shape == (B, NUM_CLASSES) and box16.shape == (B, BBOX_DIM)
    assert jnp.allclose(det16, ref_det, atol=5e-2, rtol=5e-2)
    assert jnp.allclose(box16, ref_box, atol=5e-2, rtol=5e-2)

    print("KERNEL_OK")
</pallas_src>

<mosaic_0001>
module attributes {stable_mosaic.version = 11 : i64} {
  func.func @_ensemble_head_kernel(%arg0: i32, %arg1: memref<8x1024xf32, #tpu.memory_space<vmem>>, %arg2: memref<1024x128xf32, #tpu.memory_space<vmem>>, %arg3: memref<1x128xf32, #tpu.memory_space<vmem>>, %arg4: memref<8x128xf32, #tpu.memory_space<vmem>>) attributes {dimension_semantics = [#tpu.dimension_semantics<parallel>], iteration_bounds = array<i64: 1>, scalar_prefetch = 0 : i64, scratch_operands = 0 : i64, tpu.core_type = #tpu.core_type<tc>, window_params = [{transform_indices = @transform_0, window_bounds = array<i64: 8, 1024>}, {pipeline_mode = #tpu.pipeline_mode<synchronous>, transform_indices = @transform_1, window_bounds = array<i64: 1024, 128>}, {pipeline_mode = #tpu.pipeline_mode<synchronous>, transform_indices = @transform_2, window_bounds = array<i64: 1, 128>}, {transform_indices = @transform_3, window_bounds = array<i64: 8, 128>}]} {
    %c0 = arith.constant 0 : index
    %c0_0 = arith.constant 0 : index
    %0 = vector.load %arg1[%c0, %c0_0] : memref<8x1024xf32, #tpu.memory_space<vmem>>, vector<8x1024xf32>
    %c0_1 = arith.constant 0 : index
    %c0_2 = arith.constant 0 : index
    %1 = vector.load %arg2[%c0_1, %c0_2] : memref<1024x128xf32, #tpu.memory_space<vmem>>, vector<1024x128xf32>
    %cst = arith.constant dense<0.000000e+00> : vector<8x128xf32>
    %2 = tpu.matmul %0, %1, %cst {dimension_numbers = #tpu.dot_dimension_numbers<[1], [0], [0], [1], [0, 0, 1, 1], [], []>} : vector<8x1024xf32>, vector<1024x128xf32>, vector<8x128xf32> -> vector<8x128xf32>
    %c0_3 = arith.constant 0 : index
    %c0_4 = arith.constant 0 : index
    %3 = vector.load %arg3[%c0_3, %c0_4] : memref<1x128xf32, #tpu.memory_space<vmem>>, vector<1x128xf32>
    %4 = vector.broadcast %3 : vector<1x128xf32> to vector<8x128xf32>
    %5 = arith.addf %2, %4 : vector<8x128xf32>
    %c0_5 = arith.constant 0 : index
    %c0_6 = arith.constant 0 : index
    %6 = vector.load %arg4[%c0_5, %c0_6] : memref<8x128xf32, #tpu.memory_space<vmem>>, vector<8x128xf32>
    tpu.vector_store %arg4[%c0_5, %c0_6], %5 {strides = array<i32>} : memref<8x128xf32, #tpu.memory_space<vmem>>, vector<8x128xf32>,
    return
  }
  func.func @transform_0(%arg0: i32) -> (i32, i32) {
    %c0_i32 = arith.constant 0 : i32
    %c0_i32_0 = arith.constant 0 : i32
    return %arg0, %c0_i32 : i32, i32
  }
  func.func @transform_1(%arg0: i32) -> (i32, i32) {
    %c0_i32 = arith.constant 0 : i32
    %c0_i32_0 = arith.constant 0 : i32
    %c0_i32_1 = arith.constant 0 : i32
    return %c0_i32, %c0_i32_0 : i32, i32
  }
  func.func @transform_2(%arg0: i32) -> (i32, i32) {
    %c0_i32 = arith.constant 0 : i32
    %c0_i32_0 = arith.constant 0 : i32
    %c0_i32_1 = arith.constant 0 : i32
    return %c0_i32, %c0_i32_0 : i32, i32
  }
  func.func @transform_3(%arg0: i32) -> (i32, i32) {
    %c0_i32 = arith.constant 0 : i32
    %c0_i32_0 = arith.constant 0 : i32
    return %arg0, %c0_i32 : i32, i32
  }
}

</mosaic_0001>

<bundles_post_ra>
// kernel: tpu_custom_call.1
= control target key start
LH: loop header
LB: loop body
LE: loop exit
PB: predicated region body
PF: predicated region fallthrough
CT: control target
= control target key end

     0   :  { %8 = vsyncpa [#allocation3], 0  ;;  %s1015_s0 = inlined_call_operand.hbm [shape: f32[2,1024], index: 0, kind: input, shape index: {}]   ;;  %s1016_s1 = inlined_call_operand.hbm [shape: f32[1024,128], index: 1, kind: input, shape index: {}]   ;;  %s1017_s2 = inlined_call_operand.vmem [shape: f32[1,128], index: 2, kind: input, shape index: {}]   ;;  %s1018_s3 = inlined_call_operand.hbm [shape: f32[2,128], index: 3, kind: output, shape index: {}]  }
   0x1   :  { %9 = vsyncpa [#allocation6], 0 }
   0x2   :  { %10 = vsyncpa [#allocation4], 0 }
   0x3   :  { %15 = vsyncadd [#allocation3], 768  ;;  %s936_s12 = smov [#allocation2]   ;;  %s864_s16 = scalar_lea.hbm %s1015_s0, 256 }
   0x4   :  { %s16_s13 = sshll.u32 %s936_s12, 4  ;;  %p865_p0 = scmp.ne.s32.totalorder %s1015_s0, %s864_s16  ;;  %s17_s13 = int_to_ptr.vmem [resolvable:$true] %s16_s13 }
   0x5   :  { %p868_p1 = scmp.lt.u32.totalorder %s864_s16, %s1015_s0 }
   0x7   :  { %p870_p2 = pnand %p868_p1, %p865_p0 }
   0x9   :  { %873 = shalt.err (!%p870_p2)
}
   0xa   :  { %s874_s21 = scalar_lea.vmem %s17_s13, 256  ;;  %s878_s22 = scalar_lea.vmem %s17_s13, 1024 }
   0xb   :  { %p875_p3 = scmp.ne.s32.totalorder %s17_s13, %s874_s21  ;;  %p879_p4 = scmp.lt.s32.totalorder %s17_s13, %s17_s13 }
   0xc   :  { %p880_p5 = scmp.lt.s32.totalorder %s878_s22, %s874_s21 }
   0xe   :  { %p881_p6 = por %p880_p5, %p879_p4 }
  0x10   :  { %p882_p7 = pnand %p881_p6, %p875_p3 }
  0x12   :  { %885 = shalt.err (!%p882_p7)
}
  0x13   :  { %s937_s23 = smov 256   ;;  %s938_s24 = smov 16  }
  0x14   :  { %22 = dma.hbm_to_vmem [thread:$0]  %s1015_s0, 256, %s17_s13, [#allocation3], %s937_s23, %s937_s23, %s938_s24  }
  0x15   :  { %s939_s27 = smov [#allocation5]   ;;  %s886_s4 = scalar_lea.hbm %s1016_s1, 16384 }
  0x16   :  { %s28_s28 = sshll.u32 %s939_s27, 4  ;;  %p887_p8 = scmp.ne.s32.totalorder %s1016_s1, %s886_s4  ;;  %s29_s28 = int_to_ptr.vmem [resolvable:$true] %s28_s28 }
  0x17   :  { %p890_p9 = scmp.lt.u32.totalorder %s886_s4, %s1016_s1 }
  0x19   :  { %p892_p10 = pnand %p890_p9, %p887_p8 }
  0x1b   :  { %895 = shalt.err (!%p892_p10)
}
  0x1c   :  { %s896_s9 = scalar_lea.vmem %s29_s28, 16384  ;;  %p901_p12 = scmp.lt.s32.totalorder %s29_s28, %s29_s28 }
  0x1d   :  { %p897_p11 = scmp.ne.s32.totalorder %s29_s28, %s896_s9  ;;  %p902_p13 = scmp.lt.s32.totalorder %s896_s9, %s896_s9 }
  0x1f   :  { %p903_p0 = por %p902_p13, %p901_p12 }
  0x21   :  { %p904_p1 = pnand %p903_p0, %p897_p11 }
  0x23   :  { %907 = shalt.err (!%p904_p1)
}
  0x24   :  { %s940_s0 = smov 128   ;;  %s941_s10 = smov 8  }
  0x25   :  { %34 = dma.hbm_to_vmem [thread:$0]  %s1016_s1, 16384, %s29_s28, [#allocation6], %s940_s0, %s940_s0, %s941_s10  }
  0x26   :  { %930 = dma.done.wait [#allocation3], 1024  }
  0x27   :  { %931 = vsyncadd [#allocation3], 4294966272 }
  0x28   :  { %932 = dma.done.wait [#allocation6], 16384  }
  0x29   :  { %933 = vsyncadd [#allocation6], 4294950912  ;;  %v67_v0 = vld [vmem:[#allocation5 + $0x80] sm:$0xff]  ;;  %v68_v1 = vld [vmem:[#allocation5 + $0x88] sm:$0xff]  ;;  %v942_v51 = vmov 1983009808   ;;  %v201_v53 = vlaneseq }
  0x2a   :  { %v51_v2 = vld [vmem:[#allocation5] sm:$0xff]  ;;  %v714_v3 = vpack.c.bf16 %v68_v1, %v67_v0  ;;  %v52_v4 = vld [vmem:[#allocation5 + $0x8] sm:$0xff]  ;;  %v69_v11 = vld [vmem:[#allocation5 + $0x90] sm:$0xff]  ;;  %v199_v52 = vunpack.c.l.s4 %v942_v51 }
  0x2b   :  { %v99_v5 = vld [vmem:[#allocation5 + $0x180] sm:$0xff]  ;;  %v100_v6 = vld [vmem:[#allocation5 + $0x188] sm:$0xff]  ;;  %v716_v7 = vpack.c.bf16 %v52_v4, %v51_v2  ;;  %v70_v13 = vld [vmem:[#allocation5 + $0x98] sm:$0xff] }
  0x2c   :  { %v746_v8 = vpack.c.bf16 %v100_v6, %v99_v5  ;;  %v83_v9 = vld [vmem:[#allocation5 + $0x100] sm:$0xff]  ;;  %v84_v10 = vld [vmem:[#allocation5 + $0x108] sm:$0xff]  ;;  %715 = vmatprep.subr.bf16.mxu0 %v714_v3  ;;  %v53_v14 = vld [vmem:[#allocation5 + $0x10] sm:$0xff]  ;;  %v718_v16 = vpack.c.bf16 %v70_v13, %v69_v11  ;;  %v200_v2 = vunpack.c.0.s8 %v199_v52  ;;  %v202_v3 = vshrl.u32 %v201_v53, 7 }
  0x2d   :  { %v748_v12 = vpack.c.bf16 %v84_v10, %v83_v9  ;;  %v54_v15 = vld [vmem:[#allocation5 + $0x18] sm:$0xff]  ;;  %717 = vmatpush3.bf16.msra.mxu0 %v716_v7  ;;  %v101_v18 = vld [vmem:[#allocation5 + $0x190] sm:$0xff]  ;;  %v71_v23 = vld [vmem:[#allocation5 + $0xa0] sm:$0xff] }
  0x2e   :  { %747 = vmatprep.subr.bf16.mxu1 %v746_v8  ;;  %v720_v17 = vpack.c.bf16 %v54_v15, %v53_v14  ;;  %v102_v19 = vld [vmem:[#allocation5 + $0x198] sm:$0xff]  ;;  %v85_v20 = vld [vmem:[#allocation5 + $0x110] sm:$0xff]  ;;  %v72_v24 = vld [vmem:[#allocation5 + $0xa8] sm:$0xff]  ;;  %719 = vmatprep.subr.bf16.mxu0 %v718_v16 }
  0x2f   :  { %749 = vmatpush3.bf16.msra.mxu1 %v748_v12  ;;  %v750_v21 = vpack.c.bf16 %v102_v19, %v101_v18  ;;  %v86_v22 = vld [vmem:[#allocation5 + $0x118] sm:$0xff]  ;;  %v722_v26 = vpack.c.bf16 %v72_v24, %v71_v23  ;;  %v55_v27 = vld [vmem:[#allocation5 + $0x20] sm:$0xff]  ;;  %v56_v28 = vld [vmem:[#allocation5 + $0x28] sm:$0xff] }
  0x30   :  { %v752_v25 = vpack.c.bf16 %v86_v22, %v85_v20  ;;  %v103_v29 = vld [vmem:[#allocation5 + $0x1a0] sm:$0xff]  ;;  %v104_v30 = vld [vmem:[#allocation5 + $0x1a8] sm:$0xff]  ;;  %v724_v33 = vpack.c.bf16 %v56_v28, %v55_v27  ;;  %v73_v35 = vld [vmem:[#allocation5 + $0xb0] sm:$0xff] }
  0x31   :  { %751 = vmatprep.subr.bf16.mxu1 %v750_v21  ;;  %v87_v31 = vld [vmem:[#allocation5 + $0x120] sm:$0xff]  ;;  %v88_v32 = vld [vmem:[#allocation5 + $0x128] sm:$0xff]  ;;  %721 = vmatpush3.bf16.msra.mxu0 %v720_v17  ;;  %v754_v34 = vpack.c.bf16 %v104_v30, %v103_v29  ;;  %v74_v36 = vld [vmem:[#allocation5 + $0xb8] sm:$0xff]  ;;  %v990_v21 = vsub.s32 %v200_v2, %v202_v3 }
  0x32   :  { %v57_v37 = vld [vmem:[#allocation5 + $0x30] sm:$0xff]  ;;  %723 = vmatprep.subr.bf16.mxu0 %v722_v26  ;;  %v756_v38 = vpack.c.bf16 %v88_v32, %v87_v31  ;;  %v726_v39 = vpack.c.bf16 %v74_v36, %v73_v35  ;;  %v58_v40 = vld [vmem:[#allocation5 + $0x38] sm:$0xff]  ;;  %v75_v46 = vld [vmem:[#allocation5 + $0xc0] sm:$0xff] }
  0x33   :  { %753 = vmatpush3.bf16.msra.mxu1 %v752_v25  ;;  %v105_v41 = vld [vmem:[#allocation5 + $0x1b0] sm:$0xff]  ;;  %v106_v42 = vld [vmem:[#allocation5 + $0x1b8] sm:$0xff]  ;;  %v76_v47 = vld [vmem:[#allocation5 + $0xc8] sm:$0xff]  ;;  %v728_v48 = vpack.c.bf16 %v58_v40, %v57_v37 }
  0x34   :  { %755 = vmatprep.subr.bf16.mxu1 %v754_v34  ;;  %v758_v43 = vpack.c.bf16 %v106_v42, %v105_v41  ;;  %v89_v44 = vld [vmem:[#allocation5 + $0x130] sm:$0xff]  ;;  %v90_v45 = vld [vmem:[#allocation5 + $0x138] sm:$0xff]  ;;  %v107_v49 = vld [vmem:[#allocation5 + $0x1c0] sm:$0xff]  ;;  %v730_v55 = vpack.c.bf16 %v76_v47, %v75_v46 }
  0x35   :  { %725 = vmatpush3.bf16.msra.mxu0 %v724_v33  ;;  %v108_v50 = vld [vmem:[#allocation5 + $0x1c8] sm:$0xff]  ;;  %v760_v54 = vpack.c.bf16 %v90_v45, %v89_v44  ;;  %v59_v56 = vld [vmem:[#allocation5 + $0x40] sm:$0xff]  ;;  %v77_v61 = vld [vmem:[#allocation5 + $0xd0] sm:$0xff] }
  0x36   :  { %727 = vmatprep.subr.bf16.mxu0 %v726_v39  ;;  %v60_v57 = vld [vmem:[#allocation5 + $0x48] sm:$0xff]  ;;  %v91_v58 = vld [vmem:[#allocation5 + $0x140] sm:$0xff]  ;;  %v762_v59 = vpack.c.bf16 %v108_v50, %v107_v49  ;;  %v78_v62 = vld [vmem:[#allocation5 + $0xd8] sm:$0xff] }
  0x37   :  { %757 = vmatpush3.bf16.msra.mxu1 %v756_v38  ;;  %v92_v60 = vld [vmem:[#allocation5 + $0x148] sm:$0xff]  ;;  %v109_v63 = vld [vmem:[#allocation5 + $0x1d0] sm:$0xff]  ;;  %v110_v0 = vld [vmem:[#allocation5 + $0x1d8] sm:$0xff]  ;;  %v732_v1 = vpack.c.bf16 %v60_v57, %v59_v56  ;;  %v734_v5 = vpack.c.bf16 %v78_v62, %v77_v61 }
  0x38   :  { %759 = vmatprep.subr.bf16.mxu1 %v758_v43  ;;  %v764_v4 = vpack.c.bf16 %v92_v60, %v91_v58  ;;  %v61_v6 = vld [vmem:[#allocation5 + $0x50] sm:$0xff]  ;;  %v62_v7 = vld [vmem:[#allocation5 + $0x58] sm:$0xff]  ;;  %v766_v9 = vpack.c.bf16 %v110_v0, %v109_v63  ;;  %v79_v11 = vld [vmem:[#allocation5 + $0xe0] sm:$0xff] }
  0x39   :  { %729 = vmatpush3.bf16.msra.mxu0 %v728_v48  ;;  %v93_v8 = vld [vmem:[#allocation5 + $0x150] sm:$0xff]  ;;  %v94_v10 = vld [vmem:[#allocation5 + $0x158] sm:$0xff]  ;;  %v80_v12 = vld [vmem:[#allocation5 + $0xe8] sm:$0xff]  ;;  %v736_v17 = vpack.c.bf16 %v62_v7, %v61_v6 }
  0x3a   :  { %731 = vmatprep.subr.bf16.mxu0 %v730_v55  ;;  %v63_v13 = vld [vmem:[#allocation5 + $0x60] sm:$0xff]  ;;  %v64_v14 = vld [vmem:[#allocation5 + $0x68] sm:$0xff]  ;;  %v81_v20 = vld [vmem:[#allocation5 + $0xf0] sm:$0xff]  ;;  %v768_v22 = vpack.c.bf16 %v94_v10, %v93_v8  ;;  %v738_v23 = vpack.c.bf16 %v80_v12, %v79_v11 }
  0x3b   :  { %761 = vmatpush3.bf16.msra.mxu1 %v760_v54  ;;  %v111_v15 = vld [vmem:[#allocation5 + $0x1e0] sm:$0xff]  ;;  %v112_v16 = vld [vmem:[#allocation5 + $0x1e8] sm:$0xff]  ;;  %v82_v24 = vld [vmem:[#allocation5 + $0xf8] sm:$0xff]  ;;  %v740_v30 = vpack.c.bf16 %v64_v14, %v63_v13 }
  0x3c   :  { %763 = vmatprep.subr.bf16.mxu1 %v762_v59  ;;  %v95_v18 = vld [vmem:[#allocation5 + $0x160] sm:$0xff]  ;;  %v96_v19 = vld [vmem:[#allocation5 + $0x168] sm:$0xff]  ;;  %v770_v25 = vpack.c.bf16 %v112_v16, %v111_v15  ;;  %v113_v27 = vld [vmem:[#allocation5 + $0x1f0] sm:$0xff]  ;;  %v742_v35 = vpack.c.bf16 %v82_v24, %v81_v20 }
  0x3d   :  { %733 = vmatpush3.bf16.msra.mxu0 %v732_v1  ;;  %v852_v26 = vld [vmem:[#allocation2] ss:$16 sps:$4 sm:$0xff]   ;;  %v114_v28 = vld [vmem:[#allocation5 + $0x1f8] sm:$0xff]  ;;  %v856_v32 = vld [vmem:[#allocation2 + $0x4] ss:$16 sps:$4 sm:$0xff]   ;;  %v772_v34 = vpack.c.bf16 %v96_v19, %v95_v18 }
  0x3e   :  { %735 = vmatprep.subr.bf16.mxu0 %v734_v5  ;;  %v854_v29 = vld [vmem:[#allocation2 + $0x20] ss:$16 sps:$4 sm:$0xff]   ;;  %v204_v31 = vrot.slane %v852_v26, %v990_v21  ;;  %v857_v33 = vld [vmem:[#allocation2 + $0x24] ss:$16 sps:$4 sm:$0xff]   ;;  %v66_v37 = vld [vmem:[#allocation5 + $0x78] sm:$0xff]  ;;  %v774_v40 = vpack.c.bf16 %v114_v28, %v113_v27  ;;  %v211_v44 = vrot.slane %v856_v32, %v990_v21 }
  0x3f   :  { %765 = vmatpush3.bf16.msra.mxu1 %v764_v4  ;;  %v65_v36 = vld [vmem:[#allocation5 + $0x70] sm:$0xff]  ;;  %v218_v39 = vrot.slane %v854_v29, %v990_v21  ;;  %v98_v41 = vld [vmem:[#allocation5 + $0x178] sm:$0xff]  ;;  %v131_v42 = vld [vmem:[#allocation5 + $0x280] sm:$0xff]  ;;  %v225_v45 = vrot.slane %v857_v33, %v990_v21 }
  0x40   :  { %767 = vmatprep.subr.bf16.mxu1 %v766_v9  ;;  %v97_v38 = vld [vmem:[#allocation5 + $0x170] sm:$0xff]  ;;  %v132_v43 = vld [vmem:[#allocation5 + $0x288] sm:$0xff]  ;;  %v163_v47 = vld [vmem:[#allocation5 + $0x380] sm:$0xff]  ;;  %v744_v49 = vpack.c.bf16 %v66_v37, %v65_v36 }
  0x41   :  { %737 = vmatpush3.bf16.msra.mxu0 %v736_v17  ;;  %v227_v46 = vcombine.high %v204_v31, %v218_v39  ;;  %v164_v48 = vld [vmem:[#allocation5 + $0x388] sm:$0xff]  ;;  %v229_v50 = vcombine.high %v211_v44, %v225_v45  ;;  %v776_v51 = vpack.c.bf16 %v98_v41, %v97_v38  ;;  %v778_v52 = vpack.c.bf16 %v132_v43, %v131_v42  ;;  %v115_v53 = vld [vmem:[#allocation5 + $0x200] sm:$0xff]  ;;  %v133_v58 = vld [vmem:[#allocation5 + $0x290] sm:$0xff] }
  0x42   :  { %739 = vmatprep.subr.bf16.mxu0 %v738_v23  ;;  %v116_v54 = vld [vmem:[#allocation5 + $0x208] sm:$0xff]  ;;  %v147_v55 = vld [vmem:[#allocation5 + $0x300] sm:$0xff]  ;;  %v810_v56 = vpack.c.bf16 %v164_v48, %v163_v47  ;;  %v134_v59 = vld [vmem:[#allocation5 + $0x298] sm:$0xff]  ;;  %v226_v60 = vcombine.low %v204_v31, %v218_v39  ;;  %v228_v0 = vcombine.low %v211_v44, %v225_v45 }
  0x43   :  { %769 = vmatpush3.bf16.msra.mxu1 %v768_v22  ;;  %338 = vmatprep.mubr.f32.mxu0 %v227_v46  ;;  %v148_v57 = vld [vmem:[#allocation5 + $0x308] sm:$0xff]  ;;  %v165_v61 = vld [vmem:[#allocation5 + $0x390] sm:$0xff]  ;;  %v166_v62 = vld [vmem:[#allocation5 + $0x398] sm:$0xff]  ;;  %v780_v63 = vpack.c.bf16 %v116_v54, %v115_v53  ;;  %v782_v2 = vpack.c.bf16 %v134_v59, %v133_v58 }
  0x44   :  { %771 = vmatprep.subr.bf16.mxu1 %v770_v25  ;;  %408 = vmatprep.mubr.f32.mxu1 %v229_v50  ;;  %v812_v1 = vpack.c.bf16 %v148_v57, %v147_v55  ;;  %v117_v3 = vld [vmem:[#allocation5 + $0x210] sm:$0xff]  ;;  %v118_v4 = vld [vmem:[#allocation5 + $0x218] sm:$0xff]  ;;  %v814_v6 = vpack.c.bf16 %v166_v62, %v165_v61  ;;  %v135_v8 = vld [vmem:[#allocation5 + $0x2a0] sm:$0xff] }
  0x45   :  { %741 = vmatpush3.bf16.msra.mxu0 %v740_v30  ;;  %v149_v5 = vld [vmem:[#allocation5 + $0x310] sm:$0xff]  ;;  %v150_v7 = vld [vmem:[#allocation5 + $0x318] sm:$0xff]  ;;  %v136_v9 = vld [vmem:[#allocation5 + $0x2a8] sm:$0xff]  ;;  %v784_v12 = vpack.c.bf16 %v118_v4, %v117_v3 }
  0x46   :  { %743 = vmatprep.subr.bf16.mxu0 %v742_v35  ;;  %v167_v10 = vld [vmem:[#allocation5 + $0x3a0] sm:$0xff]  ;;  %v168_v11 = vld [vmem:[#allocation5 + $0x3a8] sm:$0xff]  ;;  %v816_v13 = vpack.c.bf16 %v150_v7, %v149_v5  ;;  %v786_v14 = vpack.c.bf16 %v136_v9, %v135_v8  ;;  %v137_v20 = vld [vmem:[#allocation5 + $0x2b0] sm:$0xff] }
  0x47   :  { %773 = vmatpush3.bf16.msra.mxu1 %v772_v34  ;;  %v119_v15 = vld [vmem:[#allocation5 + $0x220] sm:$0xff]  ;;  %v120_v16 = vld [vmem:[#allocation5 + $0x228] sm:$0xff]  ;;  %v818_v18 = vpack.c.bf16 %v168_v11, %v167_v10  ;;  %v138_v22 = vld [vmem:[#allocation5 + $0x2b8] sm:$0xff] }
  0x48   :  { %775 = vmatprep.subr.bf16.mxu1 %v774_v40  ;;  %v151_v17 = vld [vmem:[#allocation5 + $0x320] sm:$0xff]  ;;  %v152_v19 = vld [vmem:[#allocation5 + $0x328] sm:$0xff]  ;;  %v169_v23 = vld [vmem:[#allocation5 + $0x3b0] sm:$0xff]  ;;  %v788_v25 = vpack.c.bf16 %v120_v16, %v119_v15  ;;  %v790_v27 = vpack.c.bf16 %v138_v22, %v137_v20 }
  0x49   :  { %745 = vmatpush3.bf16.msra.mxu0 %v744_v49  ;;  %v170_v24 = vld [vmem:[#allocation5 + $0x3b8] sm:$0xff]  ;;  %v820_v26 = vpack.c.bf16 %v152_v19, %v151_v17  ;;  %v121_v28 = vld [vmem:[#allocation5 + $0x230] sm:$0xff]  ;;  %v139_v33 = vld [vmem:[#allocation5 + $0x2c0] sm:$0xff] }
  0x4a   :  { %779 = vmatprep.subr.bf16.mxu0 %v778_v52  ;;  %v122_v29 = vld [vmem:[#allocation5 + $0x238] sm:$0xff]  ;;  %v153_v30 = vld [vmem:[#allocation5 + $0x330] sm:$0xff]  ;;  %v822_v31 = vpack.c.bf16 %v170_v24, %v169_v23  ;;  %v140_v34 = vld [vmem:[#allocation5 + $0x2c8] sm:$0xff] }
  0x4b   :  { %777 = vmatpush3.bf16.msra.mxu1 %v776_v51  ;;  %v154_v32 = vld [vmem:[#allocation5 + $0x338] sm:$0xff]  ;;  %v123_v35 = vld [vmem:[#allocation5 + $0x240] sm:$0xff]  ;;  %v124_v36 = vld [vmem:[#allocation5 + $0x248] sm:$0xff]  ;;  %v792_v40 = vpack.c.bf16 %v122_v29, %v121_v28  ;;  %v794_v45 = vpack.c.bf16 %v140_v34, %v139_v33 }
  0x4c   :  { %811 = vmatprep.subr.bf16.mxu1 %v810_v56  ;;  %339 = vmatmul.mubr.f32.vlgmr.msra.gmra.mrb[0].mxu0 %v226_v60  ;;  %v171_v37 = vld [vmem:[#allocation5 + $0x3c0] sm:$0xff]  ;;  %v172_v38 = vld [vmem:[#allocation5 + $0x3c8] sm:$0xff]  ;;  %v141_v42 = vld [vmem:[#allocation5 + $0x2d0] sm:$0xff]  ;;  %v824_v44 = vpack.c.bf16 %v154_v32, %v153_v30  ;;  %v796_v53 = vpack.c.bf16 %v124_v36, %v123_v35 }
  0x4d   :  { %781 = vmatpush3.bf16.msra.mxu0 %v780_v63  ;;  %v155_v39 = vld [vmem:[#allocation5 + $0x340] sm:$0xff]  ;;  %v156_v41 = vld [vmem:[#allocation5 + $0x348] sm:$0xff]  ;;  %v142_v43 = vld [vmem:[#allocation5 + $0x2d8] sm:$0xff]  ;;  %v826_v48 = vpack.c.bf16 %v172_v38, %v171_v37 }
  0x4e   :  { %409 = vmatmul.mubr.f32.vlgmr.msra.gmra.mrb[0].mxu1 %v228_v0  ;;  %783 = vmatprep.subr.bf16.mxu0 %v782_v2  ;;  %v173_v46 = vld [vmem:[#allocation5 + $0x3d0] sm:$0xff]  ;;  %v174_v47 = vld [vmem:[#allocation5 + $0x3d8] sm:$0xff]  ;;  %v828_v54 = vpack.c.bf16 %v156_v41, %v155_v39  ;;  %v798_v55 = vpack.c.bf16 %v142_v43, %v141_v42  ;;  %v144_v2 = vld [vmem:[#allocation5 + $0x2e8] sm:$0xff] }
  0x4f   :  { %813 = vmatpush3.bf16.msra.mxu1 %v812_v1  ;;  %v858_v49 = vld [vmem:[#allocation2 + $0x8] ss:$16 sps:$4 sm:$0xff]   ;;  %v862_v51 = vld [vmem:[#allocation2 + $0xc] ss:$16 sps:$4 sm:$0xff]   ;;  %v125_v57 = vld [vmem:[#allocation5 + $0x250] sm:$0xff]  ;;  %v830_v63 = vpack.c.bf16 %v174_v47, %v173_v46 }
  0x50   :  { %815 = vmatprep.subr.bf16.mxu1 %v814_v6  ;;  %v860_v50 = vld [vmem:[#allocation2 + $0x28] ss:$16 sps:$4 sm:$0xff]   ;;  %v863_v52 = vld [vmem:[#allocation2 + $0x2c] ss:$16 sps:$4 sm:$0xff]   ;;  %v240_v56 = vrot.slane %v858_v49, %v990_v21  ;;  %v157_v59 = vld [vmem:[#allocation5 + $0x350] sm:$0xff]  ;;  %v247_v61 = vrot.slane %v862_v51, %v990_v21 }
  0x51   :  { %785 = vmatpush3.bf16.msra.mxu0 %v784_v12  ;;  %v126_v58 = vld [vmem:[#allocation5 + $0x258] sm:$0xff]  ;;  %v254_v60 = vrot.slane %v860_v50, %v990_v21  ;;  %v261_v62 = vrot.slane %v863_v52, %v990_v21  ;;  %v143_v1 = vld [vmem:[#allocation5 + $0x2e0] sm:$0xff]  ;;  %v176_v4 = vld [vmem:[#allocation5 + $0x3e8] sm:$0xff] }
  0x52   :  { %787 = vmatprep.subr.bf16.mxu0 %v786_v14  ;;  %v158_v0 = vld [vmem:[#allocation5 + $0x358] sm:$0xff]  ;;  %v175_v3 = vld [vmem:[#allocation5 + $0x3e0] sm:$0xff]  ;;  %v800_v7 = vpack.c.bf16 %v126_v58, %v125_v57  ;;  %v802_v9 = vpack.c.bf16 %v144_v2, %v143_v1  ;;  %v128_v11 = vld [vmem:[#allocation5 + $0x268] sm:$0xff] }
  0x53   :  { %817 = vmatpush3.bf16.msra.mxu1 %v816_v13  ;;  %v263_v5 = vcombine.high %v240_v56, %v254_v60  ;;  %v265_v6 = vcombine.high %v247_v61, %v261_v62  ;;  %v832_v8 = vpack.c.bf16 %v158_v0, %v157_v59  ;;  %v127_v10 = vld [vmem:[#allocation5 + $0x260] sm:$0xff]  ;;  %v834_v21 = vpack.c.bf16 %v176_v4, %v175_v3  ;;  %v160_v13 = vld [vmem:[#allocation5 + $0x368] sm:$0xff]  ;;  %v145_v14 = vld [vmem:[#allocation5 + $0x2f0] sm:$0xff] }
  0x54   :  { %819 = vmatprep.subr.bf16.mxu1 %v818_v18  ;;  %v159_v12 = vld [vmem:[#allocation5 + $0x360] sm:$0xff]  ;;  %v146_v15 = vld [vmem:[#allocation5 + $0x2f8] sm:$0xff]  ;;  %v177_v16 = vld [vmem:[#allocation5 + $0x3f0] sm:$0xff]  ;;  %v804_v18 = vpack.c.bf16 %v128_v11, %v127_v10  ;;  %v262_v29 = vcombine.low %v240_v56, %v254_v60  ;;  %v264_v30 = vcombine.low %v247_v61, %v261_v62 }
  0x55   :  { %789 = vmatpush3.bf16.msra.mxu0 %v788_v25  ;;  %478 = vmatprep.mubr.f32.mxu0 %v263_v5  ;;  %v178_v17 = vld [vmem:[#allocation5 + $0x3f8] sm:$0xff]  ;;  %v836_v19 = vpack.c.bf16 %v160_v13, %v159_v12  ;;  %v806_v20 = vpack.c.bf16 %v146_v15, %v145_v14  ;;  %v129_v22 = vld [vmem:[#allocation5 + $0x270] sm:$0xff]  ;;  %v573_v32 = vld [vmem:[%s1017_s2] ss:$0 sm:$0xff] }
  0x56   :  { %791 = vmatprep.subr.bf16.mxu0 %v790_v27  ;;  %548 = vmatprep.mubr.f32.mxu1 %v265_v6  ;;  %v130_v23 = vld [vmem:[#allocation5 + $0x278] sm:$0xff]  ;;  %v838_v24 = vpack.c.bf16 %v178_v17, %v177_v16  ;;  %v161_v25 = vld [vmem:[#allocation5 + $0x370] sm:$0xff] }
  0x57   :  { %821 = vmatpush3.bf16.msra.mxu1 %v820_v26  ;;  %v162_v26 = vld [vmem:[#allocation5 + $0x378] sm:$0xff]  ;;  %v808_v27 = vpack.c.bf16 %v130_v23, %v129_v22 }
  0x58   :  { %823 = vmatprep.subr.bf16.mxu1 %v822_v31  ;;  %v840_v28 = vpack.c.bf16 %v162_v26, %v161_v25 }
  0x59   :  { %793 = vmatpush3.bf16.msra.mxu0 %v792_v40 }
  0x5a   :  { %795 = vmatprep.subr.bf16.mxu0 %v794_v45 }
  0x5b   :  { %825 = vmatpush3.bf16.msra.mxu1 %v824_v44 }
  0x5c   :  { %827 = vmatprep.subr.bf16.mxu1 %v826_v48 }
  0x5d   :  { %797 = vmatpush3.bf16.msra.mxu0 %v796_v53 }
  0x5e   :  { %799 = vmatprep.subr.bf16.mxu0 %v798_v55 }
  0x5f   :  { %829 = vmatpush3.bf16.msra.mxu1 %v828_v54 }
  0x60   :  { %831 = vmatprep.subr.bf16.mxu1 %v830_v63 }
  0x61   :  { %801 = vmatpush3.bf16.msra.mxu0 %v800_v7 }
  0x62   :  { %803 = vmatprep.subr.bf16.mxu0 %v802_v9 }
  0x63   :  { %833 = vmatpush3.bf16.msra.mxu1 %v832_v8 }
  0x64   :  { %835 = vmatprep.subr.bf16.mxu1 %v834_v21 }
  0x65   :  { %805 = vmatpush3.bf16.msra.mxu0 %v804_v18 }
  0x66   :  { %807 = vmatprep.subr.bf16.mxu0 %v806_v20 }
  0x67   :  { %837 = vmatpush3.bf16.msra.mxu1 %v836_v19 }
  0x68   :  { %839 = vmatprep.subr.bf16.mxu1 %v838_v24 }
  0x69   :  { %809 = vmatpush3.bf16.msra.mxu0 %v808_v27 }
  0x6b   :  { %841 = vmatpush3.bf16.msra.mxu1 %v840_v28 }
  0x6c   :  { %479 = vmatmul.mubr.f32.vlgmr.msra.gmra.mrb[2].mxu0 %v262_v29 }
  0x6e   :  { %549 = vmatmul.mubr.f32.vlgmr.msra.gmra.mrb[2].mxu1 %v264_v30 }
 0x11f   :  { %v606_v31 = vpop.f32.mrb[0].mxu0 }
 0x120   :  { %v607_v33 = vpop.f32.mrb[1].mxu0 }
 0x121   :  { %v641_v34 = vpop.f32.mrb[0].mxu1  ;;  %v608_v35 = vadd.f32 %v607_v33, %v606_v31 }
 0x122   :  { %v642_v36 = vpop.f32.mrb[1].mxu1 }
 0x123   :  { %v643_v37 = vadd.f32 %v642_v36, %v641_v34  ;;  %v341_v38 = vadd.f32 %v608_v35, %v573_v32 }
 0x125   :  { %v411_v39 = vadd.f32 %v643_v37, %v341_v38 }
 0x13f   :  { %v676_v40 = vpop.f32.mrb[2].mxu0 }
 0x140   :  { %v677_v41 = vpop.f32.mrb[3].mxu0 }
 0x141   :  { %v711_v42 = vpop.f32.mrb[2].mxu1  ;;  %v678_v43 = vadd.f32 %v677_v41, %v676_v40 }
 0x142   :  { %v712_v44 = vpop.f32.mrb[3].mxu1 }
 0x143   :  { %v713_v45 = vadd.f32 %v712_v44, %v711_v42  ;;  %v481_v46 = vadd.f32 %v678_v43, %v411_v39 }
 0x145   :  { %v551_v47 = vadd.f32 %v713_v45, %v481_v46 }
 0x147   :  { %554 = vst [vmem:[#allocation7] sm:$0xff] %v551_v47 }
 0x148   :  { %559 = vsyncadd [#allocation4], 96  ;;  %s943_s14 = smov [#allocation7]  }
 0x149   :  { %s560_s15 = sshll.u32 %s943_s14, 4  ;;  %s561_s15 = int_to_ptr.vmem [resolvable:$true] %s560_s15 }
 0x14a   :  { %s908_s2 = scalar_lea.vmem %s561_s15, 32  ;;  %s912_s16 = scalar_lea.vmem %s561_s15, 128 }
 0x14b   :  { %p909_p2 = scmp.ne.s32.totalorder %s561_s15, %s908_s2  ;;  %p913_p3 = scmp.lt.s32.totalorder %s561_s15, %s561_s15 }
 0x14c   :  { %p914_p4 = scmp.lt.s32.totalorder %s912_s16, %s908_s2 }
 0x14e   :  { %p915_p5 = por %p914_p4, %p913_p3 }
 0x150   :  { %p916_p6 = pnand %p915_p5, %p909_p2 }
 0x152   :  { %919 = shalt.err (!%p916_p6)
}
 0x153   :  { %s920_s19 = scalar_lea.hbm %s1018_s3, 32 }
 0x154   :  { %p921_p7 = scmp.ne.s32.totalorder %s1018_s3, %s920_s19  ;;  %p924_p8 = scmp.lt.u32.totalorder %s920_s19, %s1018_s3 }
 0x156   :  { %p926_p9 = pnand %p924_p8, %p921_p7 }
 0x158   :  { %929 = shalt.err (!%p926_p9)
}
 0x159   :  { %s944_s24 = smov 32   ;;  %s945_s25 = smov 2  }
 0x15a   :  { %566 = dma.vmem_to_hbm [thread:$0]  %s561_s15, 32, %s1018_s3, [#allocation4], %s944_s24, %s944_s24, %s945_s25  }
 0x15b   :  { %934 = dma.done.wait [#allocation4], 128  }
 0x15c   :  { %935 = vsyncadd [#allocation4], 4294967168 }
 0x15d   :  { %570 = vsyncpa [#allocation3], 1 }
 0x15e   :  { %571 = vsyncpa [#allocation6], 1 }
 0x15f   :  { %572 = vsyncpa [#allocation4], 1 }

</bundles_post_ra>
